<compile_context>
chip_gen: v5e
topology: v5e:2x2
jax: 0.10.0
libtpu: 0.0.40
codegen_flags: <defaults>
</compile_context>

<pallas_src>
import jax
import jax.numpy as jnp
import numpy as np
from jax import lax
from jax.experimental import pallas as pl
from jax.experimental.pallas import tpu as pltpu


# ----------------------------------------------------------------------------
# Static "module parameters" (mirrors __init__ args of ExpWarp5Loss)
# ----------------------------------------------------------------------------
YAW_WARP = 0
PITCH_WARP = 1                      # => _Pwarp = True, ord idx = 1, cons idx = 0
YAW_RANGE = [(-1.0, 1.0)]           # list of (low, high); None means "all pass"
PITCH_RANGE = [(-0.8, 0.5), (0.9, 2.0)]

assert YAW_WARP * PITCH_WARP == 0 and YAW_WARP + PITCH_WARP > 0
ORD_IDX = int(PITCH_WARP > 0)
CONS_IDX = 1 - ORD_IDX


def _range_mask(vals, ranges):
    # vals: [1, TB] float32 ; ranges: list[(low, high)] or None
    if ranges is None:
        return jnp.ones(vals.shape, dtype=jnp.bool_)
    m = None
    for lo, hi in ranges:
        t = (vals >= jnp.float32(lo)) & (vals <= jnp.float32(hi))
        m = t if m is None else (m | t)
    return m


def _make_kernel(ord_idx, cons_idx, yaw_range, pitch_range, true_b, tile_b):
    """Build the Pallas kernel body with static config baked in.

    Packed input layout (rows of the [8, TB] block):
      0: warpless yaw   1: warpless pitch
      2: lwarp    yaw   3: lwarp    pitch
      4: rwarp    yaw   5: rwarp    pitch
      6: target   yaw   7: target   pitch
    """

    def kernel(x_ref, out_ref, acc_ref):
        i = pl.program_id(0)

        @pl.when(i == 0)
        def _init():
            acc_ref[...] = jnp.zeros_like(acc_ref)

        w_ord = x_ref[0 + ord_idx:1 + ord_idx, :]      # [1, TB]
        l_ord = x_ref[2 + ord_idx:3 + ord_idx, :]
        r_ord = x_ref[4 + ord_idx:5 + ord_idx, :]
        w_cons = x_ref[0 + cons_idx:1 + cons_idx, :]
        l_cons = x_ref[2 + cons_idx:3 + cons_idx, :]
        r_cons = x_ref[4 + cons_idx:5 + cons_idx, :]
        yaw = x_ref[6:7, :]
        pitch = x_ref[7:8, :]

        # Angle-range filter AND index-based lane-validity mask (handles the
        # padded lanes of a partial last tile).
        lane = lax.broadcasted_iota(jnp.int32, (1, tile_b), 1)
        valid = (i * tile_b + lane) < true_b
        mask_b = valid & _range_mask(yaw, yaw_range) & _range_mask(pitch, pitch_range)
        mask_f = mask_b.astype(jnp.float32)

        # Masked lanes feed 0 into exp -> exp(0)-1 = 0, so no extra *mask is
        # needed on loss_1/loss_2 (and masked garbage can't poison the sums).
        d1 = jnp.where(mask_b, w_ord - l_ord, 0.0)
        d2 = jnp.where(mask_b, r_ord - w_ord, 0.0)
        loss12 = (jnp.maximum(jnp.exp(d1) - 1.0, 0.0)
                  + jnp.maximum(jnp.exp(d2) - 1.0, 0.0))
        loss3_raw = jnp.where(
            mask_b, jnp.abs(w_cons - l_cons) + jnp.abs(w_cons - r_cons), 0.0)

        # Single fused cross-lane reduction over a [3, TB] stack:
        #   row 0: loss_1 + loss_2, row 1: unscaled loss_3, row 2: count.
        stacked = jnp.concatenate([loss12, loss3_raw, mask_f], axis=0)
        acc_ref[...] += jnp.sum(stacked, axis=1, keepdims=True)       # [3, 1]

        @pl.when(i == pl.num_programs(0) - 1)
        def _finalize():
            s12 = acc_ref[0:1, :]
            s3 = acc_ref[1:2, :]
            cnt = acc_ref[2:3, :]
            total = s12 + 0.5 * s3          # 0.5 applied once to the sum
            loss = jnp.where(cnt > 0.0,
                             total / (3.0 * jnp.maximum(cnt, 1.0)),
                             jnp.float32(0.0))
            out_ref[...] = loss             # [1, 1]

    return kernel


def exp_warp5_loss(warpless, lwarp, rwarp, target, *, tile_b=16384):
    """warpless, lwarp, rwarp, target: [B, 2] float32 (columns = [yaw, pitch])."""
    B = warpless.shape[0]

    # One packed [8, B] slab: single concat + single transpose in the wrapper.
    packed = jnp.concatenate(
        [warpless, lwarp, rwarp, target], axis=1).astype(jnp.float32).T

    if B <= tile_b:
        tb = B                         # single full-array block
        num_tiles = 1
    else:
        tb = tile_b                    # multiple of 128 -> lane-aligned tiles
        num_tiles = pl.cdiv(B, tb)

    kernel = _make_kernel(ORD_IDX, CONS_IDX, YAW_RANGE, PITCH_RANGE, B, tb)

    out = pl.pallas_call(
        kernel,
        out_shape=jax.ShapeDtypeStruct((1, 1), jnp.float32),
        grid=(num_tiles,),
        in_specs=[pl.BlockSpec((8, tb), lambda i: (0, i))],
        out_specs=pl.BlockSpec((1, 1), lambda i: (0, 0)),
        scratch_shapes=[pltpu.VMEM((3, 1), jnp.float32)],
        compiler_params=pltpu.CompilerParams(
            dimension_semantics=("arbitrary",)),
    )(packed)
    return out[0, 0]


# ----------------------------------------------------------------------------
# Pure-NumPy reference (mirrors the PyTorch module) for a silent sanity check.
# ----------------------------------------------------------------------------
def _reference(warpless, lwarp, rwarp, target):
    def in_range(col, ranges):
        if ranges is None:
            return np.ones(target.shape[0], dtype=bool)
        m = np.zeros(target.shape[0], dtype=bool)
        for lo, hi in ranges:
            m |= (target[:, col] >= lo) & (target[:, col] <= hi)
        return m

    filtr = in_range(0, YAW_RANGE) & in_range(1, PITCH_RANGE)
    if not filtr.any():
        return np.float32(0.0)
    w, l, r = warpless[filtr], lwarp[filtr], rwarp[filtr]
    w_ord, l_ord, r_ord = w[:, ORD_IDX], l[:, ORD_IDX], r[:, ORD_IDX]
    w_c, l_c, r_c = w[:, CONS_IDX], l[:, CONS_IDX], r[:, CONS_IDX]
    loss1 = np.clip(np.exp(w_ord - l_ord) - 1.0, 0.0, None)
    loss2 = np.clip(np.exp(r_ord - w_ord) - 1.0, 0.0, None)
    loss3 = (np.abs(w_c - l_c) + np.abs(w_c - r_c)) / 2.0
    return (loss1.mean() + loss2.mean() + loss3.mean()) / 3.0


def _rand_inputs(key, b):
    k1, k2, k3, k4 = jax.random.split(key, 4)
    return (jax.random.normal(k1, (b, 2), dtype=jnp.float32),
            jax.random.normal(k2, (b, 2), dtype=jnp.float32),
            jax.random.normal(k3, (b, 2), dtype=jnp.float32),
            jax.random.normal(k4, (b, 2), dtype=jnp.float32))


if __name__ == "__main__":
    key = jax.random.PRNGKey(0)

    # Small single-tile case (grid of 1, full-array block).
    warpless, lwarp, rwarp, target = _rand_inputs(key, 8)
    out = jax.block_until_ready(exp_warp5_loss(warpless, lwarp, rwarp, target))
    ref = _reference(np.asarray(warpless), np.asarray(lwarp),
                     np.asarray(rwarp), np.asarray(target))
    assert np.allclose(np.asarray(out), ref, rtol=1e-5, atol=1e-5), (out, ref)

    # Tiled / partial-last-tile case (exercises accumulator + lane masking).
    warpless, lwarp, rwarp, target = _rand_inputs(jax.random.PRNGKey(0), 300)
    out2 = jax.block_until_ready(
        exp_warp5_loss(warpless, lwarp, rwarp, target, tile_b=128))
    ref2 = _reference(np.asarray(warpless), np.asarray(lwarp),
                      np.asarray(rwarp), np.asarray(target))
    assert np.allclose(np.asarray(out2), ref2, rtol=1e-5, atol=1e-5), (out2, ref2)

    print("KERNEL_OK")
</pallas_src>

<mosaic_0001>
module attributes {stable_mosaic.version = 11 : i64} {
  func.func @kernel(%arg0: i32, %arg1: memref<8x8xf32, #tpu.memory_space<vmem>>, %arg2: memref<1x1xf32, #tpu.memory_space<vmem>>, %arg3: memref<3x1xf32, #tpu.memory_space<vmem>>) attributes {dimension_semantics = [#tpu.dimension_semantics<arbitrary>], iteration_bounds = array<i64: 1>, scalar_prefetch = 0 : i64, scratch_operands = 1 : i64, tpu.core_type = #tpu.core_type<tc>, window_params = [{transform_indices = @transform_0, window_bounds = array<i64: 8, 8>}, {pipeline_mode = #tpu.pipeline_mode<synchronous>, transform_indices = @transform_1, window_bounds = array<i64: 1, 1>}]} {
    %c0_i32 = arith.constant 0 : i32
    %0 = arith.cmpi eq, %arg0, %c0_i32 : i32
    %1 = arith.extui %0 : i1 to i32
    %c0_i32_0 = arith.constant 0 : i32
    %2 = arith.cmpi ne, %1, %c0_i32_0 : i32
    scf.if %2 {
      %cst_29 = arith.constant 0.000000e+00 : f32
      %70 = vector.broadcast %cst_29 : f32 to vector<3x1xf32>
      %c0_30 = arith.constant 0 : index
      %c0_31 = arith.constant 0 : index
      %71 = vector.load %arg3[%c0_30, %c0_31] : memref<3x1xf32, #tpu.memory_space<vmem>>, vector<3x1xf32>
      tpu.vector_store %arg3[%c0_30, %c0_31], %70 {strides = array<i32>} : memref<3x1xf32, #tpu.memory_space<vmem>>, vector<3x1xf32>,
    } else {
    }
    %c1 = arith.constant 1 : index
    %c0 = arith.constant 0 : index
    %3 = vector.load %arg1[%c1, %c0] : memref<8x8xf32, #tpu.memory_space<vmem>>, vector<1x8xf32>
    %c3 = arith.constant 3 : index
    %c0_1 = arith.constant 0 : index
    %4 = vector.load %arg1[%c3, %c0_1] : memref<8x8xf32, #tpu.memory_space<vmem>>, vector<1x8xf32>
    %c5 = arith.constant 5 : index
    %c0_2 = arith.constant 0 : index
    %5 = vector.load %arg1[%c5, %c0_2] : memref<8x8xf32, #tpu.memory_space<vmem>>, vector<1x8xf32>
    %c0_3 = arith.constant 0 : index
    %c0_4 = arith.constant 0 : index
    %6 = vector.load %arg1[%c0_3, %c0_4] : memref<8x8xf32, #tpu.memory_space<vmem>>, vector<1x8xf32>
    %c2 = arith.constant 2 : index
    %c0_5 = arith.constant 0 : index
    %7 = vector.load %arg1[%c2, %c0_5] : memref<8x8xf32, #tpu.memory_space<vmem>>, vector<1x8xf32>
    %c4 = arith.constant 4 : index
    %c0_6 = arith.constant 0 : index
    %8 = vector.load %arg1[%c4, %c0_6] : memref<8x8xf32, #tpu.memory_space<vmem>>, vector<1x8xf32>
    %c6 = arith.constant 6 : index
    %c0_7 = arith.constant 0 : index
    %9 = vector.load %arg1[%c6, %c0_7] : memref<8x8xf32, #tpu.memory_space<vmem>>, vector<1x8xf32>
    %c7 = arith.constant 7 : index
    %c0_8 = arith.constant 0 : index
    %10 = vector.load %arg1[%c7, %c0_8] : memref<8x8xf32, #tpu.memory_space<vmem>>, vector<1x8xf32>
    %11 = tpu.iota {dimensions = array<i32: 1>} : vector<1x8xi32>
    %c8_i32 = arith.constant 8 : i32
    %12 = arith.muli %arg0, %c8_i32 : i32
    %13 = vector.broadcast %12 : i32 to vector<1x8xi32>
    %14 = arith.addi %13, %11 : vector<1x8xi32>
    %c8_i32_9 = arith.constant 8 : i32
    %15 = vector.broadcast %c8_i32_9 : i32 to vector<1x8xi32>
    %16 = arith.cmpi slt, %14, %15 : vector<1x8xi32>
    %cst = arith.constant -1.000000e+00 : f32
    %17 = vector.broadcast %cst : f32 to vector<1x8xf32>
    %18 = arith.cmpf oge, %9, %17 : vector<1x8xf32>
    %cst_10 = arith.constant 1.000000e+00 : f32
    %19 = vector.broadcast %cst_10 : f32 to vector<1x8xf32>
    %20 = arith.cmpf ole, %9, %19 : vector<1x8xf32>
    %21 = arith.andi %18, %20 : vector<1x8xi1>
    %22 = arith.andi %16, %21 : vector<1x8xi1>
    %cst_11 = arith.constant -8.000000e-01 : f32
    %23 = vector.broadcast %cst_11 : f32 to vector<1x8xf32>
    %24 = arith.cmpf oge, %10, %23 : vector<1x8xf32>
    %cst_12 = arith.constant 5.000000e-01 : f32
    %25 = vector.broadcast %cst_12 : f32 to vector<1x8xf32>
    %26 = arith.cmpf ole, %10, %25 : vector<1x8xf32>
    %27 = arith.andi %24, %26 : vector<1x8xi1>
    %cst_13 = arith.constant 0.899999976 : f32
    %28 = vector.broadcast %cst_13 : f32 to vector<1x8xf32>
    %29 = arith.cmpf oge, %10, %28 : vector<1x8xf32>
    %cst_14 = arith.constant 2.000000e+00 : f32
    %30 = vector.broadcast %cst_14 : f32 to vector<1x8xf32>
    %31 = arith.cmpf ole, %10, %30 : vector<1x8xf32>
    %32 = arith.andi %29, %31 : vector<1x8xi1>
    %33 = arith.ori %27, %32 : vector<1x8xi1>
    %34 = arith.andi %22, %33 : vector<1x8xi1>
    %35 = arith.extui %34 : vector<1x8xi1> to vector<1x8xi32>
    %36 = arith.sitofp %35 : vector<1x8xi32> to vector<1x8xf32>
    %37 = arith.subf %3, %4 : vector<1x8xf32>
    %cst_15 = arith.constant 0.000000e+00 : f32
    %38 = vector.broadcast %cst_15 : f32 to vector<1x8xf32>
    %39 = arith.select %34, %37, %38 : vector<1x8xi1>, vector<1x8xf32>
    %40 = arith.subf %5, %3 : vector<1x8xf32>
    %cst_16 = arith.constant 0.000000e+00 : f32
    %41 = vector.broadcast %cst_16 : f32 to vector<1x8xf32>
    %42 = arith.select %34, %40, %41 : vector<1x8xi1>, vector<1x8xf32>
    %43 = math.exp %39 : vector<1x8xf32>
    %cst_17 = arith.constant 1.000000e+00 : f32
    %44 = vector.broadcast %cst_17 : f32 to vector<1x8xf32>
    %45 = arith.subf %43, %44 : vector<1x8xf32>
    %cst_18 = arith.constant 0.000000e+00 : f32
    %46 = vector.broadcast %cst_18 : f32 to vector<1x8xf32>
    %47 = arith.maximumf %45, %46 : vector<1x8xf32>
    %48 = math.exp %42 : vector<1x8xf32>
    %cst_19 = arith.constant 1.000000e+00 : f32
    %49 = vector.broadcast %cst_19 : f32 to vector<1x8xf32>
    %50 = arith.subf %48, %49 : vector<1x8xf32>
    %cst_20 = arith.constant 0.000000e+00 : f32
    %51 = vector.broadcast %cst_20 : f32 to vector<1x8xf32>
    %52 = arith.maximumf %50, %51 : vector<1x8xf32>
    %53 = arith.addf %47, %52 : vector<1x8xf32>
    %54 = arith.subf %6, %7 : vector<1x8xf32>
    %55 = math.absf %54 : vector<1x8xf32>
    %56 = arith.subf %6, %8 : vector<1x8xf32>
    %57 = math.absf %56 : vector<1x8xf32>
    %58 = arith.addf %55, %57 : vector<1x8xf32>
    %cst_21 = arith.constant 0.000000e+00 : f32
    %59 = vector.broadcast %cst_21 : f32 to vector<1x8xf32>
    %60 = arith.select %34, %58, %59 : vector<1x8xi1>, vector<1x8xf32>
    %61 = tpu.concatenate %53, %60, %36 in 0 : vector<1x8xf32>, vector<1x8xf32>, vector<1x8xf32> -> vector<3x8xf32>
    %c0_22 = arith.constant 0 : index
    %c0_23 = arith.constant 0 : index
    %62 = vector.load %arg3[%c0_22, %c0_23] : memref<3x1xf32, #tpu.memory_space<vmem>>, vector<3x1xf32>
    %cst_24 = arith.constant dense<0.000000e+00> : vector<3xf32>
    %63 = vector.multi_reduction <add>, %61, %cst_24 [1] : vector<3x8xf32> to vector<3xf32>
    %64 = vector.shape_cast %63 : vector<3xf32> to vector<3x1xf32>
    %65 = arith.addf %62, %64 : vector<3x1xf32>
    %c0_25 = arith.constant 0 : index
    %c0_26 = arith.constant 0 : index
    %66 = vector.load %arg3[%c0_25, %c0_26] : memref<3x1xf32, #tpu.memory_space<vmem>>, vector<3x1xf32>
    tpu.vector_store %arg3[%c0_25, %c0_26], %65 {strides = array<i32>} : memref<3x1xf32, #tpu.memory_space<vmem>>, vector<3x1xf32>,
    %c0_i32_27 = arith.constant 0 : i32
    %67 = arith.cmpi eq, %arg0, %c0_i32_27 : i32
    %68 = arith.extui %67 : i1 to i32
    %c0_i32_28 = arith.constant 0 : i32
    %69 = arith.cmpi ne, %68, %c0_i32_28 : i32
    scf.if %69 {
      %c0_29 = arith.constant 0 : index
      %c0_30 = arith.constant 0 : index
      %70 = vector.load %arg3[%c0_29, %c0_30] : memref<3x1xf32, #tpu.memory_space<vmem>>, vector<1x1xf32>
      %c1_31 = arith.constant 1 : index
      %c0_32 = arith.constant 0 : index
      %71 = vector.load %arg3[%c1_31, %c0_32] : memref<3x1xf32, #tpu.memory_space<vmem>>, vector<1x1xf32>
      %c2_33 = arith.constant 2 : index
      %c0_34 = arith.constant 0 : index
      %72 = vector.load %arg3[%c2_33, %c0_34] : memref<3x1xf32, #tpu.memory_space<vmem>>, vector<1x1xf32>
      %cst_35 = arith.constant 5.000000e-01 : f32
      %73 = vector.broadcast %cst_35 : f32 to vector<1x1xf32>
      %74 = arith.mulf %73, %71 : vector<1x1xf32>
      %75 = arith.addf %70, %74 : vector<1x1xf32>
      %cst_36 = arith.constant 0.000000e+00 : f32
      %76 = vector.broadcast %cst_36 : f32 to vector<1x1xf32>
      %77 = arith.cmpf ogt, %72, %76 : vector<1x1xf32>
      %cst_37 = arith.constant 1.000000e+00 : f32
      %78 = vector.broadcast %cst_37 : f32 to vector<1x1xf32>
      %79 = arith.maximumf %72, %78 : vector<1x1xf32>
      %cst_38 = arith.constant 3.000000e+00 : f32
      %80 = vector.broadcast %cst_38 : f32 to vector<1x1xf32>
      %81 = arith.mulf %80, %79 : vector<1x1xf32>
      %82 = arith.divf %75, %81 : vector<1x1xf32>
      %cst_39 = arith.constant 0.000000e+00 : f32
      %83 = vector.broadcast %cst_39 : f32 to vector<1x1xf32>
      %84 = arith.select %77, %82, %83 : vector<1x1xi1>, vector<1x1xf32>
      %c0_40 = arith.constant 0 : index
      %c0_41 = arith.constant 0 : index
      %85 = vector.load %arg2[%c0_40, %c0_41] : memref<1x1xf32, #tpu.memory_space<vmem>>, vector<1x1xf32>
      tpu.vector_store %arg2[%c0_40, %c0_41], %84 {strides = array<i32>} : memref<1x1xf32, #tpu.memory_space<vmem>>, vector<1x1xf32>,
    } else {
    }
    return
  }
  func.func @transform_0(%arg0: i32) -> (i32, i32) {
    %c0_i32 = arith.constant 0 : i32
    %c0_i32_0 = arith.constant 0 : i32
    return %c0_i32, %arg0 : i32, i32
  }
  func.func @transform_1(%arg0: i32) -> (i32, i32) {
    %c0_i32 = arith.constant 0 : i32
    %c0_i32_0 = arith.constant 0 : i32
    %c0_i32_1 = arith.constant 0 : i32
    return %c0_i32, %c0_i32_0 : i32, i32
  }
}

</mosaic_0001>

<bundles_post_ra>
// kernel: tpu_custom_call.1
= control target key start
LH: loop header
LB: loop body
LE: loop exit
PB: predicated region body
PF: predicated region fallthrough
CT: control target
= control target key end

     0   :  { %6 = vsyncpa [#allocation4], 0  ;;  %s237_s0 = inlined_call_operand.hbm [shape: f32[8,8], index: 0, kind: input, shape index: {}]   ;;  %s238_s1 = inlined_call_operand.hbm [shape: f32[1,1], index: 1, kind: output, shape index: {}]  }
   0x1   :  { %7 = vsyncpa [#allocation5], 0  ;;  %s13_s8 = sshll.u32 %s237_s0, 4  ;;  %s204_s9 = smov [#allocation3]   ;;  %s14_s8 = int_to_ptr.hbm [resolvable:$true] %s13_s8 }
   0x2   :  { %s15_s10 = sshll.u32 %s204_s9, 4  ;;  %s16_s10 = int_to_ptr.vmem [resolvable:$true] %s15_s10 }
   0x3   :  { %18 = dma.hbm_to_vmem [thread:$0]  %s14_s8, 128, %s16_s10, [#allocation4]  }
   0x4   :  { %200 = dma.done.wait [#allocation4], 128  }
   0x5   :  { %201 = vsyncadd [#allocation4], 4294967168  ;;  %vm27_vm0 = vcmask 2048   ;;  %v37_v0 = vlaneseq  ;;  %v205_v1 = vmov 0.0   ;;  %v29_v3 = vld [vmem:[#allocation3 + $0x1] sm:$0x1] }
   0x6   :  { %28 = vst.msk [vmem:[#allocation2] sm:$0x7] %vm27_vm0, %v205_v1  ;;  %v30_v4 = vld [vmem:[#allocation3 + $0x3] sm:$0x1]  ;;  %v31_v5 = vld [vmem:[#allocation3 + $0x5] sm:$0x1] }
   0x7   :  { %v38_v2 = vand.u32 127, %v37_v0  ;;  %v35_v6 = vld [vmem:[#allocation3 + $0x6] sm:$0x1]  ;;  %v36_v7 = vld [vmem:[#allocation3 + $0x7] sm:$0x1]  ;;  %v57_v11 = vsub.f32 %v29_v3, %v30_v4  ;;  %v59_v12 = vsub.f32 %v31_v5, %v29_v3  ;;  %vm82_vm14 = vcmask 1040384  }
   0x8   :  { %vm43_vm2 = vcmp.ge.f32.partialorder %v35_v6, -1.0  ;;  %vm44_vm3 = vcmp.le.f32.partialorder %v35_v6, 1.0  ;;  %vm47_vm4 = vcmp.ge.f32.partialorder %v36_v7, -0.8  ;;  %vm48_vm5 = vcmp.le.f32.partialorder %v36_v7, 0.5  ;;  %s206_s0 = smov [#allocation6]  }
   0x9   :  { %vm42_vm1 = vcmp.lt.s32.totalorder %v38_v2, 8  ;;  %v32_v8 = vld [vmem:[#allocation3] sm:$0x1]  ;;  %vm45_vm6 = vmand %vm43_vm2, %vm44_vm3  ;;  %vm50_vm7 = vcmp.ge.f32.partialorder %v36_v7, 0.9  ;;  %vm51_vm8 = vcmp.le.f32.partialorder %v36_v7, 2.0 }
   0xa   :  { %v33_v9 = vld [vmem:[#allocation3 + $0x2] sm:$0x1]  ;;  %v34_v10 = vld [vmem:[#allocation3 + $0x4] sm:$0x1]  ;;  %vm46_vm9 = vmand %vm42_vm1, %vm45_vm6  ;;  %vm84_vm15 = vcmask 1041408   ;;  %vm87_vm1 = vcmask 59392  }
   0xb   :  { %vm49_vm10 = vmand %vm47_vm4, %vm48_vm5  ;;  %v70_v13 = vsub.f32 %v32_v8, %v33_v9  ;;  %v72_v14 = vsub.f32 %v32_v8, %v34_v10  ;;  %s128_s11 = sshll.u32 %s206_s0, 4  ;;  %s130_s14 = sshll.u32 %s238_s1, 4  ;;  %vm121_vm5 = vcmask 0   ;;  %s129_s11 = int_to_ptr.vmem [resolvable:$true] %s128_s11  ;;  %s131_s14 = int_to_ptr.hbm [resolvable:$true] %s130_s14 }
   0xc   :  { %vm52_vm11 = vmand %vm50_vm7, %vm51_vm8 }
   0xd   :  { %vm53_vm12 = vmor %vm49_vm10, %vm52_vm11  ;;  %v71_v20 = vand.u32 2147483647, %v70_v13  ;;  %v73_v21 = vand.u32 2147483647, %v72_v14  ;;  %v86_v37 = vld [vmem:[#allocation2] sm:$0x7] }
   0xe   :  { %vm221_vm13 = vmand %vm46_vm9, %vm53_vm12 }
   0xf   :  { %v58_v16 = vsel %vm221_vm13, %v57_v11, 0.0  ;;  %v60_v17 = vsel %vm221_vm13, %v59_v12, 0.0  ;;  %v74_v22 = vadd.f32 %v73_v21, %v71_v20  ;;  %v140_v27 = vsel %vm221_vm13, 1.0, %v205_v1 }
  0x10   :  { %v61_v18 = vmul.f32 1.442695, %v58_v16  ;;  %v65_v19 = vmul.f32 1.442695, %v60_v17  ;;  %v80_v32 = vrot.slane %v140_v27, 6 }
  0x11   :  { %v75_v26 = vsel %vm221_vm13, %v74_v22, 0.0 }
  0x12   :  { %146 = vpow2.f32 %v61_v18  ;;  %v77_v31 = vrot.slane %v75_v26, 7 }
  0x13   :  { %148 = vpow2.f32 %v65_v19 }
  0x18   :  { %v147_v23 = vpop.eup %146 }
  0x19   :  { %v149_v24 = vpop.eup %148  ;;  %v141_v25 = vadd.f32 -1.0, %v147_v23 }
  0x1a   :  { %v142_v28 = vadd.f32 -1.0, %v149_v24 }
  0x1b   :  { %v64_v29 = vmax.f32 %v141_v25, 0.0 }
  0x1c   :  { %v68_v30 = vmax.f32 %v142_v28, 0.0 }
  0x1e   :  { %v69_v33 = vadd.f32 %v68_v30, %v64_v29 }
  0x20   :  { %v83_v34 = vsel %vm82_vm14, %v69_v33, %v77_v31 }
  0x21   :  { %v85_v35 = vsel %vm84_vm15, %v83_v34, %v80_v32 }
  0x22   :  { %v88_v36 = vsel %vm87_vm1, %v85_v35, 0.0 }
  0x23   :  { %89 = vadd.xlane.f32.xlu0 %v88_v36 }
  0x96   :  { %v90_v38 = vpop.xlane.xlu0 %89 }
  0x97   :  { %v91_v39 = vadd.f32 %v90_v38, %v86_v37 }
  0x99   :  { %93 = vst.msk [vmem:[#allocation2] sm:$0x7] %vm27_vm0, %v91_v39 }
  0xa0   :  { %v99_v40 = vld [vmem:[#allocation2 + $0x2] sm:$0x1]  ;;  %v98_v45 = vld [vmem:[#allocation2 + $0x1] sm:$0x1]  ;;  %v97_v52 = vld [vmem:[#allocation2] sm:$0x1] }
  0xa1   :  { %v103_v41 = vmax.f32 %v99_v40, 1.0  ;;  %v100_v48 = vmul.f32 0.5, %v98_v45  ;;  %vm102_vm6 = vcmp.gt.f32.partialorder %v99_v40, 0.0 }
  0xa3   :  { %v104_v42 = vmul.f32 3.0, %v103_v41  ;;  %v101_v54 = vadd.f32 %v100_v48, %v97_v52 }
  0xa5   :  { %150 = vrcp.f32 %v104_v42  ;;  %v116_v47 = vand.u32 2147483648, %v104_v42  ;;  %v114_v50 = vand.u32 2147483647, %v104_v42  ;;  %vm110_vm3 = vweird.f32 %v104_v42 }
  0xa7   :  { %v117_v53 = vor.u32 1.1754944e-38, %v116_v47  ;;  %vm115_vm0 = vcmp.eq.f32.partialorder %v114_v50, 8.507059e+37 }
  0xab   :  { %v151_v43 = vpop.eup %150 }
  0xac   :  { %v106_v44 = vmul.f32 %v151_v43, %v104_v42  ;;  %vm111_vm2 = vweird.f32 %v151_v43 }
  0xad   :  { %vm112_vm4 = vmor %vm110_vm3, %vm111_vm2 }
  0xae   :  { %v107_v46 = vsub.f32 1.0, %v106_v44 }
  0xb0   :  { %v108_v49 = vmul.f32 %v151_v43, %v107_v46 }
  0xb2   :  { %v109_v51 = vadd.f32 %v151_v43, %v108_v49 }
  0xb4   :  { %v113_v55 = vsel %vm112_vm4, %v151_v43, %v109_v51 }
  0xb5   :  { %v118_v56 = vsel %vm115_vm0, %v117_v53, %v113_v55 }
  0xb6   :  { %v119_v57 = vmul.f32 %v118_v56, %v101_v54 }
  0xb8   :  { %v120_v58 = vsel %vm102_vm6, %v119_v57, 0.0 }
  0xb9   :  { %122 = vst.msk [vmem:[#allocation6] sm:$0x1] %vm121_vm5, %v120_v58 }
  0xba   :  { %133 = dma.vmem_to_hbm [thread:$0]  %s129_s11, 16, %s131_s14, [#allocation5]  }
  0xbb   :  { %202 = dma.done.wait [#allocation5], 16  }
  0xbc   :  { %203 = vsyncadd [#allocation5], 4294967280 }
  0xbd   :  { %138 = vsyncpa [#allocation4], 1 }
  0xbe   :  { %139 = vsyncpa [#allocation5], 1 }

</bundles_post_ra>
